<compile_context>
chip_gen: v6e
topology: v6e:2x2x1
jax: 0.10.0
libtpu: 0.0.40
codegen_flags: <defaults>
</compile_context>

<pallas_src>
import functools

import jax
import jax.numpy as jnp
from jax.experimental import pallas as pl
from jax.experimental.pallas import tpu as pltpu


def _focal_loss_kernel(logits_ref, target_ref, wt_ref, out_ref, acc_ref, *,
                       gamma, n_rows, tile_n, tiles_per_core, needs_mask):
    """Per tile: ce_i = w[t_i] * (logsumexp(logits_i) - logits_i[t_i]);
    accumulates sum_i (1 - exp(-ce_i))**gamma * ce_i into the per-core
    accumulator; the last tile of each core writes the partial sum."""
    t_idx = pl.program_id(1)          # tile index within this core (carried axis)

    @pl.when(t_idx == 0)
    def _():
        acc_ref[...] = jnp.zeros_like(acc_ref)

    logits = logits_ref[...].astype(jnp.float32)      # (TILE_N, C), f32 cast in VMEM
    target = target_ref[...]                          # (TILE_N, 1) int32
    w_t = wt_ref[...]                                 # (TILE_N, 1) f32 (weight[target])
    tn, nc = logits.shape

    # Numerically stable log-sum-exp; keep the shifted logits live so the
    # target gather reuses them (saves a full-tile subtract).
    row_max = jnp.max(logits, axis=-1, keepdims=True)                        # (TILE_N, 1)
    shifted = logits - row_max                                               # (TILE_N, C)
    logsum = jnp.log(jnp.sum(jnp.exp(shifted), axis=-1, keepdims=True))      # (TILE_N, 1)

    # One-hot gather of the target logit as a masked cross-lane reduce.
    col = jax.lax.broadcasted_iota(jnp.int32, (tn, nc), 1)
    shifted_t = jnp.sum(jnp.where(col == target, shifted, 0.0),
                        axis=-1, keepdims=True)                              # (TILE_N, 1)

    # ce_i = w[t_i] * (lse_i - logit_i[t_i]) = w_t * (logsum - shifted_t)
    ce = w_t * (logsum - shifted_t)                                          # (TILE_N, 1)

    if needs_mask:
        # Padded / out-of-range rows: select (NOT multiply-by-zero) so any
        # NaN/Inf from garbage rows never reaches exp/pow or the accumulator.
        block_idx = pl.program_id(0) * tiles_per_core + t_idx
        row = jax.lax.broadcasted_iota(jnp.int32, (tn, 1), 0) + block_idx * tile_n
        ce = jnp.where(row < n_rows, ce, 0.0)

    # focal = (1 - exp(-ce))**gamma * ce
    p = jnp.exp(-ce)
    base = jnp.maximum(1.0 - p, 0.0)   # clamp tiny negative 1-p (fp rounding)
    if gamma == 0.0:
        focal = ce
    elif float(gamma).is_integer() and 1.0 <= gamma <= 4.0:
        f = base
        for _ in range(int(gamma) - 1):   # repeated VALU multiplies, no pow
            f = f * base
        focal = f * ce
    else:
        focal = base ** gamma * ce

    acc_ref[...] = acc_ref[...] + jnp.sum(focal, axis=(0, 1), keepdims=True)

    @pl.when(t_idx == pl.num_programs(1) - 1)
    def _():
        # Lane-dense per-core partial-sum slab; wrapper reads [core, 0, 0].
        out_ref[...] = jnp.broadcast_to(acc_ref[...].reshape(1, 1, 1), out_ref.shape)


def _vmem_budget_bytes():
    """Returns (working-set budget for tile picking, vmem_limit_bytes) per TC.

    v7x: 64 MiB physical VMEM per TC -> keep the kernel's steady state ~40 MiB.
    v5e/v5p/v6e: 128 MiB physical -> bigger tiles amortize per-step overhead.
    Unknown hardware: stay conservative (fits a 16 MiB scoped VMEM)."""
    try:
        kind = jax.devices()[0].device_kind.lower()
    except Exception:
        kind = ""
    if "v7" in kind:
        return 40 << 20, 48 << 20
    if "v5" in kind or "v6" in kind:
        return 64 << 20, 80 << 20
    return 8 << 20, 14 << 20


def _pick_tile_n(rows_per_core, c, logits_itemsize, working_budget):
    """Largest multiple-of-8 row tile whose steady-state VMEM footprint stays
    under `working_budget`:
      2 double-buffered logits tiles (input dtype)
      + ~5 tile-sized f32 temporaries (f32 cast / shifted / exp / iota / select)
      + double-buffered (tile, 1) target + gathered-weight streams.
    No hard row cap: for small C the byte budget decides (large tiles amortize
    the ~0.35 us per-grid-step overhead and keep the DMA streaming)."""
    bytes_per_row = 2 * c * logits_itemsize + 5 * c * 4 + 2 * 2 * (4 + 4)
    t = working_budget // max(1, bytes_per_row)
    t = max(8, (t // 8) * 8)
    t = min(t, max(8, ((rows_per_core + 7) // 8) * 8))   # no point past per-core rows
    return int(t)


def focal_loss_tpu(output_logits, target, weight=None, gamma=0.0, tile_n=None,
                   num_cores=2):
    """Pallas version of FocalLoss(weight=weight, gamma=gamma)(output_logits, target)."""
    assert gamma >= 0
    n, c = output_logits.shape
    logits = output_logits                      # keep input dtype on the DMA
    tgt = target.astype(jnp.int32).reshape(n, 1)
    if weight is None:
        w_t = jnp.ones((n, 1), dtype=jnp.float32)
    else:
        # Gather class weights in the wrapper: (N,1) stream instead of a
        # (TILE_N, C) broadcast multiply inside the kernel.
        w_t = jnp.asarray(weight, dtype=jnp.float32)[target].reshape(n, 1)

    working_budget, vmem_limit = _vmem_budget_bytes()

    rows_per_core = pl.cdiv(n, num_cores)
    if tile_n is None:
        tile_n = _pick_tile_n(rows_per_core, c,
                              jnp.dtype(logits.dtype).itemsize, working_budget)
    num_row_blocks = pl.cdiv(n, tile_n)         # number of valid logits blocks
    if num_row_blocks < num_cores:              # tiny inputs: no point splitting
        num_cores = 1
    tiles_per_core = pl.cdiv(num_row_blocks, num_cores)
    # Padding exists if either the last block is partial or the core split
    # produces extra (fully out-of-range) blocks.
    needs_mask = (num_cores * tiles_per_core * tile_n) != n

    last_block = num_row_blocks - 1

    def row_block(ci, ti):
        # Clamp out-of-range blocks (possible only for the trailing core) onto
        # the last valid block; their rows are masked out in the kernel.
        return jnp.minimum(ci * tiles_per_core + ti, last_block)

    kernel = functools.partial(
        _focal_loss_kernel, gamma=float(gamma), n_rows=n, tile_n=tile_n,
        tiles_per_core=tiles_per_core, needs_mask=needs_mask)

    out = pl.pallas_call(
        kernel,
        out_shape=jax.ShapeDtypeStruct((num_cores, 8, 128), jnp.float32),
        grid_spec=pltpu.PrefetchScalarGridSpec(
            num_scalar_prefetch=0,
            grid=(num_cores, tiles_per_core),
            in_specs=[
                pl.BlockSpec((tile_n, c), lambda ci, ti: (row_block(ci, ti), 0)),  # logits
                pl.BlockSpec((tile_n, 1), lambda ci, ti: (row_block(ci, ti), 0)),  # target
                pl.BlockSpec((tile_n, 1), lambda ci, ti: (row_block(ci, ti), 0)),  # weight[target]
            ],
            out_specs=pl.BlockSpec((1, 8, 128), lambda ci, ti: (ci, 0, 0)),
            scratch_shapes=[pltpu.VMEM((1, 1), jnp.float32)],   # per-core running sum
        ),
        compiler_params=pltpu.CompilerParams(
            # core axis parallel (uses both TCs on v7x); batch axis carries the
            # per-core accumulator, hence arbitrary.
            dimension_semantics=("parallel", "arbitrary"),
            vmem_limit_bytes=vmem_limit,
        ),
    )(logits, tgt, w_t)

    # Mean over N samples (matches cross_entropy(reduction='none').mean()).
    return jnp.sum(out[:, 0, 0]) * (1.0 / float(n))


def _focal_loss_ref(output_logits, target, weight=None, gamma=0.0):
    """Pure-JAX reference mirroring the PyTorch semantics."""
    logits = output_logits.astype(jnp.float32)
    n, c = logits.shape
    if weight is None:
        weight = jnp.ones((c,), jnp.float32)
    logp = jax.nn.log_softmax(logits, axis=-1)
    ce = -weight[target] * jnp.take_along_axis(logp, target[:, None], axis=-1)[:, 0]
    p = jnp.exp(-ce)
    return jnp.mean((1.0 - p) ** gamma * ce) if gamma != 0.0 else jnp.mean(ce)


if __name__ == "__main__":
    key = jax.random.PRNGKey(0)
    k1, k2, k3 = jax.random.split(key, 3)

    N, C = 20, 32          # N not a multiple of tile/cores -> exercises edge masking
    logits_f32 = jax.random.normal(k1, (N, C), dtype=jnp.float32)
    target = jax.random.randint(k2, (N,), 0, C, dtype=jnp.int32)
    class_w = jax.random.uniform(k3, (C,), dtype=jnp.float32, minval=0.5, maxval=2.0)

    cases = [
        # tile_n=8 forces several grid steps per core + an out-of-range block.
        dict(logits=logits_f32, weight=None,    gamma=0.0, tile_n=8,    atol=1e-5),
        dict(logits=logits_f32, weight=class_w, gamma=2.0, tile_n=8,    atol=1e-5),
        dict(logits=logits_f32.astype(jnp.bfloat16), weight=class_w, gamma=2.0,
             tile_n=8, atol=1e-4),
        # auto tile-size path (byte-budget picker, partial last block).
        dict(logits=logits_f32, weight=class_w, gamma=2.0, tile_n=None, atol=1e-5),
    ]
    for case in cases:
        got = focal_loss_tpu(case["logits"], target, weight=case["weight"],
                             gamma=case["gamma"], tile_n=case["tile_n"])
        got = jax.block_until_ready(got)
        ref = _focal_loss_ref(case["logits"], target, weight=case["weight"],
                              gamma=case["gamma"])
        assert jnp.allclose(got, ref, atol=case["atol"], rtol=1e-4), (
            case["gamma"], case["tile_n"], got, ref)

    print("KERNEL_OK")
</pallas_src>

<mosaic_0001>
module attributes {stable_mosaic.version = 11 : i64} {
  func.func @_focal_loss_kernel(%arg0: i32, %arg1: i32, %arg2: memref<8x32xf32, #tpu.memory_space<vmem>>, %arg3: memref<8x1xi32, #tpu.memory_space<vmem>>, %arg4: memref<8x1xf32, #tpu.memory_space<vmem>>, %arg5: memref<1x8x128xf32, #tpu.memory_space<vmem>>, %arg6: memref<1x1xf32, #tpu.memory_space<vmem>>) attributes {dimension_semantics = [#tpu.dimension_semantics<parallel>, #tpu.dimension_semantics<arbitrary>], iteration_bounds = array<i64: 2, 2>, scalar_prefetch = 0 : i64, scratch_operands = 1 : i64, tpu.core_type = #tpu.core_type<tc>, window_params = [{transform_indices = @transform_0, window_bounds = array<i64: 8, 32>}, {transform_indices = @transform_1, window_bounds = array<i64: 8, 1>}, {transform_indices = @transform_2, window_bounds = array<i64: 8, 1>}, {transform_indices = @transform_3, window_bounds = array<i64: 1, 8, 128>}]} {
    %c0_i32 = arith.constant 0 : i32
    %0 = arith.cmpi eq, %arg1, %c0_i32 : i32
    %1 = arith.extui %0 : i1 to i32
    %c0_i32_0 = arith.constant 0 : i32
    %2 = arith.cmpi ne, %1, %c0_i32_0 : i32
    scf.if %2 {
      %cst_16 = arith.constant 0.000000e+00 : f32
      %44 = vector.broadcast %cst_16 : f32 to vector<1x1xf32>
      %c0_17 = arith.constant 0 : index
      %c0_18 = arith.constant 0 : index
      %45 = vector.load %arg6[%c0_17, %c0_18] : memref<1x1xf32, #tpu.memory_space<vmem>>, vector<1x1xf32>
      tpu.vector_store %arg6[%c0_17, %c0_18], %44 {strides = array<i32>} : memref<1x1xf32, #tpu.memory_space<vmem>>, vector<1x1xf32>,
    } else {
    }
    %c0 = arith.constant 0 : index
    %c0_1 = arith.constant 0 : index
    %3 = vector.load %arg2[%c0, %c0_1] : memref<8x32xf32, #tpu.memory_space<vmem>>, vector<8x32xf32>
    %c0_2 = arith.constant 0 : index
    %c0_3 = arith.constant 0 : index
    %4 = vector.load %arg3[%c0_2, %c0_3] : memref<8x1xi32, #tpu.memory_space<vmem>>, vector<8x1xi32>
    %c0_4 = arith.constant 0 : index
    %c0_5 = arith.constant 0 : index
    %5 = vector.load %arg4[%c0_4, %c0_5] : memref<8x1xf32, #tpu.memory_space<vmem>>, vector<8x1xf32>
    %cst = arith.constant dense<0xFF800000> : vector<8xf32>
    %6 = vector.multi_reduction <maximumf>, %3, %cst [1] : vector<8x32xf32> to vector<8xf32>
    %7 = vector.shape_cast %6 : vector<8xf32> to vector<8x1xf32>
    %8 = vector.broadcast %7 : vector<8x1xf32> to vector<8x32xf32>
    %9 = arith.subf %3, %8 : vector<8x32xf32>
    %10 = math.exp %9 : vector<8x32xf32>
    %cst_6 = arith.constant dense<0.000000e+00> : vector<8xf32>
    %11 = vector.multi_reduction <add>, %10, %cst_6 [1] : vector<8x32xf32> to vector<8xf32>
    %12 = vector.shape_cast %11 : vector<8xf32> to vector<8x1xf32>
    %13 = math.log %12 : vector<8x1xf32>
    %14 = tpu.iota {dimensions = array<i32: 1>} : vector<8x32xi32>
    %15 = vector.broadcast %4 : vector<8x1xi32> to vector<8x32xi32>
    %16 = arith.cmpi eq, %14, %15 : vector<8x32xi32>
    %cst_7 = arith.constant 0.000000e+00 : f32
    %17 = vector.broadcast %cst_7 : f32 to vector<8x32xf32>
    %18 = arith.select %16, %9, %17 : vector<8x32xi1>, vector<8x32xf32>
    %cst_8 = arith.constant dense<0.000000e+00> : vector<8xf32>
    %19 = vector.multi_reduction <add>, %18, %cst_8 [1] : vector<8x32xf32> to vector<8xf32>
    %20 = vector.shape_cast %19 : vector<8xf32> to vector<8x1xf32>
    %21 = arith.subf %13, %20 : vector<8x1xf32>
    %22 = arith.mulf %5, %21 : vector<8x1xf32>
    %c2_i32 = arith.constant 2 : i32
    %23 = arith.muli %arg0, %c2_i32 : i32
    %24 = arith.addi %23, %arg1 : i32
    %25 = tpu.iota {dimensions = array<i32: 0>} : vector<8x1xi32>
    %c8_i32 = arith.constant 8 : i32
    %26 = arith.muli %24, %c8_i32 : i32
    %27 = vector.broadcast %26 : i32 to vector<8x1xi32>
    %28 = arith.addi %25, %27 : vector<8x1xi32>
    %c20_i32 = arith.constant 20 : i32
    %29 = vector.broadcast %c20_i32 : i32 to vector<8x1xi32>
    %30 = arith.cmpi slt, %28, %29 : vector<8x1xi32>
    %cst_9 = arith.constant 0.000000e+00 : f32
    %31 = vector.broadcast %cst_9 : f32 to vector<8x1xf32>
    %32 = arith.select %30, %22, %31 : vector<8x1xi1>, vector<8x1xf32>
    %c0_10 = arith.constant 0 : index
    %c0_11 = arith.constant 0 : index
    %33 = vector.load %arg6[%c0_10, %c0_11] : memref<1x1xf32, #tpu.memory_space<vmem>>, vector<1x1xf32>
    %34 = vector.shape_cast %32 : vector<8x1xf32> to vector<1x8x1xf32>
    %cst_12 = arith.constant dense<0.000000e+00> : vector<1xf32>
    %35 = vector.multi_reduction <add>, %34, %cst_12 [1, 2] : vector<1x8x1xf32> to vector<1xf32>
    %36 = vector.shape_cast %35 : vector<1xf32> to vector<1x1x1xf32>
    %37 = vector.extract %36[0, 0, 0] : f32 from vector<1x1x1xf32>
    %38 = vector.broadcast %37 : f32 to vector<1x1xf32>
    %39 = arith.addf %33, %38 : vector<1x1xf32>
    %c0_13 = arith.constant 0 : index
    %c0_14 = arith.constant 0 : index
    %40 = vector.load %arg6[%c0_13, %c0_14] : memref<1x1xf32, #tpu.memory_space<vmem>>, vector<1x1xf32>
    tpu.vector_store %arg6[%c0_13, %c0_14], %39 {strides = array<i32>} : memref<1x1xf32, #tpu.memory_space<vmem>>, vector<1x1xf32>,
    %c1_i32 = arith.constant 1 : i32
    %41 = arith.cmpi eq, %arg1, %c1_i32 : i32
    %42 = arith.extui %41 : i1 to i32
    %c0_i32_15 = arith.constant 0 : i32
    %43 = arith.cmpi ne, %42, %c0_i32_15 : i32
    scf.if %43 {
      %c0_16 = arith.constant 0 : index
      %c0_17 = arith.constant 0 : index
      %44 = vector.load %arg6[%c0_16, %c0_17] : memref<1x1xf32, #tpu.memory_space<vmem>>, vector<1x1xf32>
      %45 = vector.shape_cast %44 : vector<1x1xf32> to vector<1x1x1xf32>
      %46 = vector.shape_cast %45 : vector<1x1x1xf32> to vector<1x1x1xf32>
      %47 = vector.broadcast %46 : vector<1x1x1xf32> to vector<1x8x128xf32>
      %c0_18 = arith.constant 0 : index
      %c0_19 = arith.constant 0 : index
      %c0_20 = arith.constant 0 : index
      %48 = vector.load %arg5[%c0_18, %c0_19, %c0_20] : memref<1x8x128xf32, #tpu.memory_space<vmem>>, vector<1x8x128xf32>
      tpu.vector_store %arg5[%c0_18, %c0_19, %c0_20], %47 {strides = array<i32>} : memref<1x8x128xf32, #tpu.memory_space<vmem>>, vector<1x8x128xf32>,
    } else {
    }
    return
  }
  func.func @transform_0(%arg0: i32, %arg1: i32) -> (i32, i32) {
    %c2_i32 = arith.constant 2 : i32
    %0 = arith.muli %arg0, %c2_i32 : i32
    %1 = arith.addi %0, %arg1 : i32
    %c2_i32_0 = arith.constant 2 : i32
    %2 = arith.minsi %1, %c2_i32_0 : i32
    %c0_i32 = arith.constant 0 : i32
    %c0_i32_1 = arith.constant 0 : i32
    return %2, %c0_i32 : i32, i32
  }
  func.func @transform_1(%arg0: i32, %arg1: i32) -> (i32, i32) {
    %c2_i32 = arith.constant 2 : i32
    %0 = arith.muli %arg0, %c2_i32 : i32
    %1 = arith.addi %0, %arg1 : i32
    %c2_i32_0 = arith.constant 2 : i32
    %2 = arith.minsi %1, %c2_i32_0 : i32
    %c0_i32 = arith.constant 0 : i32
    %c0_i32_1 = arith.constant 0 : i32
    return %2, %c0_i32 : i32, i32
  }
  func.func @transform_2(%arg0: i32, %arg1: i32) -> (i32, i32) {
    %c2_i32 = arith.constant 2 : i32
    %0 = arith.muli %arg0, %c2_i32 : i32
    %1 = arith.addi %0, %arg1 : i32
    %c2_i32_0 = arith.constant 2 : i32
    %2 = arith.minsi %1, %c2_i32_0 : i32
    %c0_i32 = arith.constant 0 : i32
    %c0_i32_1 = arith.constant 0 : i32
    return %2, %c0_i32 : i32, i32
  }
  func.func @transform_3(%arg0: i32, %arg1: i32) -> (i32, i32, i32) {
    %c0_i32 = arith.constant 0 : i32
    %c0_i32_0 = arith.constant 0 : i32
    %c0_i32_1 = arith.constant 0 : i32
    return %arg0, %c0_i32, %c0_i32_0 : i32, i32, i32
  }
}

</mosaic_0001>

<bundles_post_ra>
// kernel: tpu_custom_call.1
= control target key start
LH: loop header
LB: loop body
LE: loop exit
PB: predicated region body
PF: predicated region fallthrough
CT: control target
= control target key end

     0   :  { %8 = vsyncpa [#allocation4], 0  ;;  %s869_s0 = inlined_call_operand.vmem [shape: f32[20,32], index: 0, kind: input, shape index: {}]   ;;  %s870_s1 = inlined_call_operand.vmem [shape: s32[20,1], index: 1, kind: input, shape index: {}]   ;;  %s871_s2 = inlined_call_operand.vmem [shape: f32[20,1], index: 2, kind: input, shape index: {}]   ;;  %s872_s3 = inlined_call_operand.hbm [shape: f32[2,8,128], index: 3, kind: output, shape index: {}]  }
   0x1   :  { %10 = vsyncpa [#allocation4 + $0x1], 0  ;;  %s713_s12 = smov 0   ;;  %s715_s13 = smov 0  }
   0x2   :  { %s717_s14 = smov 0   ;;  %s719_s15 = smov 0  }
   0x3   :  { %s721_s16 = smov 0   ;;  %s723_s17 = smov 0  }
   0x4   :  { %s725_s18 = smov 0   ;;  %s727_s19 = smov 0  }
   0x5 LB: > { %s477_s20 = sadd.s32 4294967295, %s687_s19   ;;  %s478_s21 = sadd.s32 4294967294, %s687_s19   ;;  %s687_s19 = sphi %s727_s19, %s16_s19   ;;  %s683_s18 = sphi %s725_s18, %s883_s18   ;;  %s679_s17 = sphi %s723_s17, %s882_s17   ;;  %s675_s16 = sphi %s721_s16, %s881_s16   ;;  %s671_s15 = sphi %s719_s15, %s880_s15   ;;  %s667_s14 = sphi %s717_s14, %s879_s14   ;;  %s663_s13 = sphi %s715_s13, %s878_s13   ;;  %s659_s12 = sphi %s713_s12, %s877_s12  }
   0x6   : > { %s25_s22 = sadd.s32 1, %s679_s17  ;;  %s28_s23 = sadd.s32 1, %s683_s18 }
   0x7   : > { %p26_p0 = scmp.ge.s32.totalorder %s25_s22, 2  ;;  %p147_p1 = scmp.ne.s32.totalorder %s667_s14, %s663_s13 }
   0x8   : > { %p148_p2 = scmp.eq.s32.totalorder %s477_s20, 3  ;;  %p153_p4 = scmp.ne.s32.totalorder %s663_s13, %s659_s12 }
   0x9   : > { %s885_s22 = smov (%p26_p0, %s25_s22), 0  ;;  %s887_s23 = smov (!%p26_p0, %s28_s23), %s683_s18 }
   0xa   : > { %p762_p3 = por %p148_p2, %p147_p1  ;;  %p30_p5 = scmp.ge.s32.totalorder %s887_s23, 2 }
   0xb   : > { %p154_p6 = scmp.eq.s32.totalorder %s478_s21, 3  ;;  %p487_p7 = scmp.ge.s32.totalorder %s687_s19, 1 }
   0xc   : > { %p217_p8 = scmp.lt.s32.totalorder %s687_s19, 5  ;;  %s889_s23 = smov (%p30_p5, %s887_s23), 0 }
   0xd   : > { %p772_p9 = por %p154_p6, %p153_p4  ;;  %s134_s26 = ssub.s32 %s683_s18, %s889_s23 }
   0xe   : > { %p218_p10 = pnand %p487_p7, %p217_p8  ;;  %s137_s27 = sadd.s32 1, %s667_s14 }
   0xf   : > { %p135_p11 = scmp.eq.s32.totalorder %s134_s26, 0  ;;  %s873_s29 = sand.u32 (!%p218_p10), 1, %s663_s13  }
  0x10   : > { %221 = sbr.rel (%p218_p10) target bundleno = 708 (0x2c4), region = 32  ;;  %s489_s30 = sshll.u32 (!%p218_p10), %s675_s16, 1 }
  0x11   : > { %s780_s28 = scalar_select %p135_p11, %s667_s14, %s137_s27  }
  0x12   : > { %s786_s4 = sshll.u32 (!%p218_p10), %s873_s29, 3  ;;  %s789_s5 = sadd.s32 (!%p218_p10), %s671_s15, %s489_s30 }
  0x13   : > { %p262_p12 = scmp.lt.s32.totalorder (!%p218_p10), %s789_s5, 2  ;;  %s259_s29 = scalar_lea.vmem (!%p218_p10), [#allocation3], %s786_s4 }
  0x14   : > { %p504_p13 = scmp.ne.s32.totalorder (!%p218_p10), %s671_s15, 0 }
  0x15   : > { %s263_s6 = scalar_select %p262_p12, %s789_s5, 2 }
  0x16   : > { %299 = sbr.rel (%p504_p13) target bundleno = 29 (0x1d), region = 36 }
  0x17   : > { %s891_s6 = smov (!%p262_p12, %s263_s6), 2 }
  0x18   : > { %s793_s7 = sshll.u32 %s891_s6, 3 }
  0x19   : > { %s267_s10 = scalar_lea.vmem %s869_s0, %s793_s7  ;;  %s279_s21 = scalar_lea.vmem %s870_s1, %s793_s7 }
  0x1a   : > { %s291_s30 = scalar_lea.vmem %s871_s2, %s793_s7 }
  0x1b   : > { %vm300_vm0 = vcmask 0   ;;  %v689_v0 = vmov 0.0  }
  0x1c   : > { %301 = vst.msk [vmem:[#allocation2] sm:$0x1] %vm300_vm0, %v689_v0 }
  0x1d PF: > { %v302_v1 = vld [vmem:[%s267_s10] sm:$0xff]  ;;  %vm305_vm1 = vcmask 261120   ;;  %v690_v3 = vmov 0   ;;  %v317_v8 = vlaneseq  ;;  %s506_s6 = sshll.u32 %s789_s5, 3  ;;  %vm339_vm4 = vcmask 7168   ;;  %p507_p0 = scmp.ne.s32.totalorder %s671_s15, 1 }
  0x1e   : > { %v306_v2 = vsel %vm305_vm1, %v302_v1, -inf  ;;  %589 = vset.pattern.permute.xlu0 %v690_v3  ;;  %v303_v4 = vld [vmem:[%s279_s21] sm:$0xff]  ;;  %v334_v17 = vstv %s506_s6  ;;  %vm352_vm5 = vcmask 0  }
  0x1f   : > { %307 = vmax.xlane.f32.xlu0 %v306_v2  ;;  %v318_v9 = vand.u32 127, %v317_v8  ;;  %v332_v16 = vshrl.u32 %v317_v8, 7  ;;  %v304_v21 = vld [vmem:[%s291_s30] sm:$0xff] }
  0x21   : > { %v335_v19 = vadd.s32 %v334_v17, %v332_v16 }
  0x23   : > { %vm336_vm3 = vcmp.lt.s32.totalorder %v335_v19, 20  ;;  %v338_v34 = vld [vmem:[#allocation2] sm:$0x1] }
  0x35   : > { %320 = vperm.xlu0 %589, %v303_v4  }
  0xa8   : > { %v308_v5 = vpop.xlane.xlu0 %307 }
  0xa9   : > { %v309_v6 = vsub.f32 %v302_v1, %v308_v5 }
  0xab   : > { %v310_v7 = vmul.f32 1.442695, %v309_v6 }
  0xad   : > { %590 = vpow2.f32 %v310_v7 }
  0xb0   : > { %v321_v10 = vpop.permute.xlu0 %320 }
  0xb1   : > { %vm322_vm2 = vcmp.eq.s32.totalorder %v318_v9, %v321_v10 }
  0xb2   : > { %v323_v13 = vsel %vm322_vm2, %v309_v6, 0.0 }
  0xb3   : > { %v324_v14 = vsel %vm305_vm1, %v323_v13, 0.0 }
  0xba   : > { %v591_v11 = vpop.eup %590 }
  0xbb   : > { %v312_v12 = vsel %vm305_vm1, %v591_v11, 0.0 }
  0xbc   : > { %313 = vadd.xlane.f32.xlu1 %v312_v12 }
  0xc0   : > { %325 = vadd.xlane.f32.xlu1 %v324_v14 }
 0x145   : > { %v314_v15 = vpop.xlane.xlu1 %313 }
 0x146   : > { %592 = vlog2.f32 %v314_v15 }
 0x149   : > { %v326_v22 = vpop.xlane.xlu1 %325 }
 0x153   : > { %v593_v18 = vpop.eup %592 }
 0x154   : > { %v316_v20 = vmul.f32 0.6931472, %v593_v18 }
 0x156   : > { %v327_v23 = vsub.f32 %v316_v20, %v326_v22 }
 0x158   : > { %v328_v24 = vmul.f32 %v327_v23, %v304_v21 }
 0x15a   : > { %v337_v25 = vsel %vm336_vm3, %v328_v24, 0.0 }
 0x15b   : > { %v340_v26 = vsel %vm339_vm4, %v337_v25, 0.0 }
 0x15c   : > { %341 = vadd.xlane.f32.xlu1 %v340_v26 }
 0x1e5   : > { %v342_v27 = vpop.xlane.xlu1 %341 }
 0x1e6   : > { %v343_v28 = vrot.slane %v342_v27, 4 }
 0x1e8   : > { %v344_v29 = vadd.f32 %v343_v28, %v342_v27 }
 0x1ea   : > { %v345_v30 = vrot.slane %v344_v29, 2 }
 0x1ec   : > { %v346_v31 = vadd.f32 %v345_v30, %v344_v29 }
 0x1ee   : > { %v347_v32 = vrot.slane %v346_v31, 1 }
 0x1f0   : > { %v348_v33 = vadd.f32 %v347_v32, %v346_v31 }
 0x1f2   : > { %513 = vpush %v348_v33 }
 0x223   : > { %s514_s5 = spop %513  ;;  %357 = sbr.rel (%p507_p0) target bundleno = 684 (0x2ac), region = 40 }
 0x224   : > { %v350_v35 = vstv %s514_s5 }
 0x225   : > { %v351_v36 = vadd.f32 %v350_v35, %v338_v34 }
 0x227   : > { %353 = vst.msk [vmem:[#allocation2] sm:$0x1] %vm352_vm5, %v351_v36 }
 0x228   : > { %v691_v38 = vmov 0  }
 0x229   : > { %594 = vset.pattern.permute.xlu0 %v691_v38 }
 0x22e   : > { %v508_v37 = vld [vmem:[#allocation2] ss:$0 sm:$0xff] }
 0x22f   : > { %365 = vperm.xlu0 %594, %v508_v37  }
 0x2aa   : > { %v366_v39 = vpop.permute.xlu0 %365 }
 0x2ab   : > { %368 = vst [vmem:[%s259_s29] sm:$0xff] %v366_v39 }
 0x2ac PF: > { %s510_s7 = sshll.u32 %s675_s16, 7  ;;  %s383_s15 = sshll.u32 %s259_s29, 4  ;;  %s384_s15 = int_to_ptr.vmem [resolvable:$true] %s383_s15 }
 0x2ad   : > { %s381_s20 = scalar_lea.hbm %s872_s3, %s510_s7  ;;  %s876_s21 = sand.u32 1, %s663_s13  }
 0x2ae   : > { %s370_s26 = scalar_lea.sflag [#allocation4], %s876_s21  ;;  %s595_s27 = scalar_lea.vmem %s384_s15, 128 }
 0x2af   : > { %p596_p1 = scmp.ne.s32.totalorder %s384_s15, %s595_s27  ;;  %s692_s30 = smov [#allocation3]  }
 0x2b0   : > { %s599_s6 = sshll.u32 %s692_s30, 4  ;;  %s600_s6 = int_to_ptr.vmem [resolvable:$false] %s599_s6 }
 0x2b1   : > { %p597_p2 = pnand %p596_p1, %p762_p3  ;;  %s601_s8 = scalar_lea.vmem %s600_s6, 256 }
 0x2b2   : > { %p602_p5 = scmp.lt.s32.totalorder %s384_s15, %s600_s6  ;;  %p603_p6 = scmp.lt.s32.totalorder %s601_s8, %s595_s27 }
 0x2b3   : > { %p598_p4 = pneg %p597_p2 }
 0x2b4   : > { %p604_p7 = por %p603_p6, %p602_p5 }
 0x2b6   : > { %p605_p8 = pnand %p604_p7, %p598_p4 }
 0x2b8   : > { %608 = shalt.err (!%p605_p8)
}
 0x2b9   : > { %s609_s16 = scalar_lea.hbm %s381_s20, 128  ;;  %s613_s9 = scalar_lea.hbm %s872_s3, 256 }
 0x2ba   : > { %p610_p10 = scmp.ne.s32.totalorder %s381_s20, %s609_s16  ;;  %p614_p13 = scmp.lt.s32.totalorder %s381_s20, %s872_s3 }
 0x2bb   : > { %p615_p0 = scmp.lt.s32.totalorder %s613_s9, %s609_s16 }
 0x2bc   : > { %p611_p11 = pnand %p610_p10, %p762_p3 }
 0x2bd   : > { %p616_p1 = por %p615_p0, %p614_p13 }
 0x2be   : > { %p612_p12 = pneg %p611_p11 }
 0x2c0   : > { %p617_p2 = pnand %p616_p1, %p612_p12 }
 0x2c2   : > { %620 = shalt.err (!%p617_p2)
}
 0x2c3   : > { %515 = dma.vmem_to_hbm [thread:$0]  (%p762_p3), %s384_s15, 128, %s381_s20, %s370_s26  }
 0x2c4 PF: > { %p521_p4 = scmp.ge.s32.totalorder %s687_s19, 2  ;;  %s395_s10 = sand.u32 1, %s659_s12  }
 0x2c5   : > { %s396_s11 = scalar_lea.sflag [#allocation4], %s395_s10 }
 0x2c6   : > { %p518_p5 = pnand %p521_p4, %p772_p9 }
 0x2c8   : > { %p519_p6 = pneg %p518_p5 }
 0x2ca   : > { %654 = dma.done.wait (%p519_p6), %s396_s11, 128  }
 0x2cb   : > { %656 = vsyncadd (%p519_p6), %s396_s11, 4294967168  ;;  %s16_s19 = sadd.s32 1, %s687_s19   ;;  %s877_s12 = smov %s663_s13 }
 0x2cc   : > { %p13_p7 = scmp.ge.s32.totalorder %s16_s19, 6   ;;  %s878_s13 = smov %s667_s14 }
 0x2cd   : > { %s879_s14 = smov %s780_s28  ;;  %s880_s15 = smov %s679_s17 }
 0x2ce   : > { %s881_s16 = smov %s683_s18  ;;  %s882_s17 = smov %s885_s22 }
 0x2cf   : > { %s883_s18 = smov %s889_s23  ;;  %15 = sbr.rel (!%p13_p7) target bundleno = 5 (0x5), region = 81 }
 0x2d4   :  { %401 = vsyncpa [#allocation4], 1 }
 0x2d5   :  { %403 = vsyncpa [#allocation4 + $0x1], 1 }

</bundles_post_ra>
